<compile_context>
chip_gen: v6e
topology: v6e:2x2x1
jax: 0.10.0
libtpu: 0.0.40
codegen_flags: <defaults>
</compile_context>

<pallas_src>
import functools

import jax
import jax.numpy as jnp
from jax import lax
from jax.experimental import pallas as pl
from jax.experimental.pallas import tpu as pltpu


def _round_up(x, m):
    return ((x + m - 1) // m) * m


def _encoder_kernel(ids_ref, price_ref, fused_ref, const_ref, out_ref, *,
                    nb, nm, na, nc, ni, n_color_slots, k_chunk, mh_dtype):
    """One tile of tokens.

    ids_ref   : (TN, 5+C) int32 -- [brand, material, author, item, color_num,
                                    color_0 .. color_{C-1}]
    price_ref : (TN, 1)   f32
    fused_ref : (Vpad, D) bf16  -- row-concat of pre-folded brand / material /
                                   author / color / (item + text) tables,
                                   zero-padded to a multiple of k_chunk rows
    const_ref : (3, D)    f32   -- [row_pos; row_neg; bias] (price fold + bias)
    out_ref   : (TN, D)   f32
    """
    f32 = jnp.float32
    tn, d = out_ref.shape
    v_pad = fused_ref.shape[0]

    off_m = nb
    off_a = nb + nm
    off_c = nb + nm + na
    off_i = nb + nm + na + nc
    v_used = off_i + ni

    ids = ids_ref[...]                                   # (TN, 5+C) int32
    brand = ids[:, 0:1]
    mat = ids[:, 1:2] + off_m
    auth = ids[:, 2:3] + off_a
    item = ids[:, 3:4] + off_i
    cnum = ids[:, 4:5].astype(f32)
    price = price_ref[...]                               # (TN, 1) f32

    # color mean denominator: 1 / clamp(color_num, 1), applied to the multi-hot
    # weights (EUP reciprocal slot, essentially free).
    inv_den = pl.reciprocal(jnp.maximum(cnum, 1.0), approx=True).astype(mh_dtype)

    acc = jnp.zeros((tn, d), f32)

    # K-chunked fused multi-hot gather-matmul: only chunks whose row range
    # intersects a table contribute that table's compare (static skipping).
    for chunk in range(v_pad // k_chunk):
        lo = chunk * k_chunk
        hi = lo + k_chunk
        iota = lax.broadcasted_iota(jnp.int32, (tn, k_chunk), 1) + lo

        terms = []
        if lo < nb:                                       # brand   [0, nb)
            terms.append((iota == brand).astype(mh_dtype))
        if lo < off_a and hi > off_m:                     # material[off_m, off_a)
            terms.append((iota == mat).astype(mh_dtype))
        if lo < off_c and hi > off_a:                     # author  [off_a, off_c)
            terms.append((iota == auth).astype(mh_dtype))
        if lo < v_used and hi > off_i:                    # item    [off_i, v_used)
            terms.append((iota == item).astype(mh_dtype))
        if lo < off_i and hi > off_c:                     # color   [off_c, off_i)
            cnt = (iota == ids[:, 5:6] + off_c).astype(mh_dtype)
            for k in range(1, n_color_slots):
                cnt = cnt + (iota == ids[:, 5 + k:6 + k] + off_c).astype(mh_dtype)
            terms.append(cnt * inv_den)
        if not terms:
            continue                                      # pure zero-padding chunk

        mh = terms[0]
        for t in terms[1:]:
            mh = mh + t
        acc = acc + jnp.dot(mh, fused_ref[pl.ds(lo, k_chunk), :],
                            preferred_element_type=f32)

    # Price path (exact fold of ReLU(p*w_p1) @ w_p2t @ w_f_cat) + bias.
    consts = const_ref[...]                               # (3, D) f32
    acc = (acc
           + jnp.maximum(price, 0.0) * consts[0:1, :]
           + jnp.maximum(-price, 0.0) * consts[1:2, :]
           + consts[2:3, :])
    out_ref[...] = acc.astype(out_ref.dtype)


def encode(batch, params, *, tile_n=512, k_chunk=256, mh_dtype=jnp.bfloat16):
    """batch fields are (B, L, ...); returns (B, L, D) float32.

    mh_dtype: bf16 on v6e/v7x (bf16-native VALU, halves multi-hot bytes);
              pass jnp.float32 on v5e.
    """
    B, L = batch['in_item_id'].shape
    C = batch['in_color'].shape[-1]
    D = params['item_tab'].shape[1]
    N = B * L
    f32 = jnp.float32
    i32 = jnp.int32
    hp = jax.lax.Precision.HIGHEST
    mm = functools.partial(jnp.matmul, precision=hp)

    nb = params['brand_tab'].shape[0]
    nm = params['mat_tab'].shape[0]
    na = params['auth_tab'].shape[0]
    nc = params['color_tab'].shape[0]
    ni = params['item_tab'].shape[0]

    # ---- fold the trailing Linears into the tables (once, at trace time) ----
    w_cat, w_txt, w_id = params['w_f_cat'], params['w_f_txt'], params['w_f_id']
    brand_f = mm(params['brand_tab'], w_cat)
    mat_f = mm(params['mat_tab'], w_cat)
    auth_f = mm(params['auth_tab'], w_cat)
    color_f = mm(params['color_tab'], w_cat)
    item_f = mm(params['item_tab'], w_id) + mm(mm(params['text_tab'],
                                                  params['w_tt']), w_txt)
    fused = jnp.concatenate([brand_f, mat_f, auth_f, color_f, item_f], axis=0)
    v_tot = fused.shape[0]
    v_pad = _round_up(v_tot, k_chunk)
    fused_p = jnp.pad(fused, ((0, v_pad - v_tot), (0, 0))).astype(jnp.bfloat16)

    # exact price-path fold: ReLU(p*w) = ReLU(p)*ReLU(w) + ReLU(-p)*ReLU(-w)
    w_p2f = mm(params['w_p2t'], w_cat)                          # (D, D)
    row_pos = mm(jnp.maximum(params['w_p1'], 0.0), w_p2f)       # (1, D)
    row_neg = mm(jnp.maximum(-params['w_p1'], 0.0), w_p2f)      # (1, D)
    bias = params['b_f'] + mm(params['b_t'], w_txt)             # (1, D)
    consts = jnp.concatenate([row_pos, row_neg, bias], axis=0).astype(f32)

    # ---- pack per-token ids (int32) and price (f32) --------------------------
    ids = jnp.concatenate(
        [batch['in_brand'].reshape(N, 1),
         batch['in_material'].reshape(N, 1),
         batch['in_author'].reshape(N, 1),
         batch['in_item_id'].reshape(N, 1),
         batch['in_color_num'].reshape(N, 1),
         batch['in_color'].reshape(N, C)], axis=-1).astype(i32)   # (N, 5+C)
    price = batch['in_price'].reshape(N, 1).astype(f32)           # (N, 1)

    # ---- tile selection: pad to a tile multiple; keep >=2 grid steps when
    # possible so a v7x chip can use both TensorCores -------------------------
    n8 = _round_up(max(N, 1), 8)
    half = _round_up((n8 + 1) // 2, 8)
    tile = max(8, min(tile_n, half))
    n_pad = _round_up(N, tile)
    if n_pad != N:
        # padded rows use id 0 / price 0; their outputs are garbage (the folded
        # item+text row 0 is non-zero) and are sliced off below.
        ids = jnp.pad(ids, ((0, n_pad - N), (0, 0)))
        price = jnp.pad(price, ((0, n_pad - N), (0, 0)))
    w_id_cols = 5 + C

    kernel = functools.partial(_encoder_kernel, nb=nb, nm=nm, na=na, nc=nc,
                               ni=ni, n_color_slots=C, k_chunk=k_chunk,
                               mh_dtype=mh_dtype)

    bytes_accessed = int(ids.size * 4 + price.size * 4 + fused_p.size * 2
                         + consts.size * 4 + n_pad * D * 4)
    cost = pl.CostEstimate(flops=2 * n_pad * v_pad * D,
                           transcendentals=n_pad,
                           bytes_accessed=bytes_accessed)

    out = pl.pallas_call(
        kernel,
        out_shape=jax.ShapeDtypeStruct((n_pad, D), jnp.float32),
        grid=(n_pad // tile,),
        in_specs=[pl.BlockSpec((tile, w_id_cols), lambda i: (i, 0)),
                  pl.BlockSpec((tile, 1), lambda i: (i, 0)),
                  pl.BlockSpec(fused_p.shape, lambda i: (0, 0)),
                  pl.BlockSpec(consts.shape, lambda i: (0, 0))],
        out_specs=pl.BlockSpec((tile, D), lambda i: (i, 0)),
        compiler_params=pltpu.CompilerParams(
            dimension_semantics=("parallel",)),
        cost_estimate=cost,
    )(ids, price, fused_p, consts)

    return out[:N, :].reshape(B, L, D)


def reference(batch, params):
    """Pure-JAX f32 reference matching the PyTorch forward (is_target=False)."""
    hp = jax.lax.Precision.HIGHEST
    mm = functools.partial(jnp.matmul, precision=hp)

    brand = params['brand_tab'][batch['in_brand']]
    mat = params['mat_tab'][batch['in_material']]
    auth = params['auth_tab'][batch['in_author']]
    feature = brand + mat + auth

    price_emb = jnp.maximum(batch['in_price'][..., None] * params['w_p1'], 0.0)
    feature = feature + mm(price_emb, params['w_p2t'])

    color_emb = params['color_tab'][batch['in_color']].sum(axis=-2)
    denom = jnp.maximum(batch['in_color_num'].astype(jnp.float32), 1.0)[..., None]
    feature = feature + color_emb / denom

    text = mm(params['text_tab'][batch['in_item_id']], params['w_tt']) + params['b_t']
    id_emb = params['item_tab'][batch['in_item_id']]

    return (mm(feature, params['w_f_cat']) + mm(text, params['w_f_txt'])
            + mm(id_emb, params['w_f_id']) + params['b_f'])


def _zero_pad_row(tab):
    return tab.at[0].set(0.0)   # torch Embedding padding_idx=0 zeroes row 0


if __name__ == "__main__":
    B, L, D, T, C = 2, 8, 32, 64, 4          # batch, seq len, embed dim, text dim, max colors
    NI, NB, NM, NA, NC = 64, 32, 32, 32, 16  # vocab sizes

    key = jax.random.PRNGKey(0)
    ks = jax.random.split(key, 20)

    params = {
        'item_tab':  _zero_pad_row(0.02 * jax.random.normal(ks[0], (NI, D), jnp.float32)),
        'brand_tab': _zero_pad_row(0.02 * jax.random.normal(ks[1], (NB, D), jnp.float32)),
        'mat_tab':   _zero_pad_row(0.02 * jax.random.normal(ks[2], (NM, D), jnp.float32)),
        'auth_tab':  _zero_pad_row(0.02 * jax.random.normal(ks[3], (NA, D), jnp.float32)),
        'color_tab': _zero_pad_row(0.02 * jax.random.normal(ks[4], (NC, D), jnp.float32)),
        # frozen text vectors (Embedding.from_pretrained: no padding-row zeroing)
        'text_tab':  0.05 * jax.random.normal(ks[5], (NI, T), jnp.float32),
        # linear_price (1 -> D, no bias), stored as (1, D)
        'w_p1':      0.1 * jax.random.normal(ks[6], (1, D), jnp.float32),
        # linear_price_2 (D -> D, no bias), stored pre-transposed
        'w_p2t':     0.1 * jax.random.normal(ks[7], (D, D), jnp.float32),
        # item_text_mlp: Linear(T -> D) (+ bias), stored pre-transposed
        'w_tt':      0.1 * jax.random.normal(ks[8], (T, D), jnp.float32),
        'b_t':       0.01 * jax.random.normal(ks[9], (1, D), jnp.float32),
        # feat_id_mlp: Linear(3D -> D) (+ bias), weight split into 3 DxD blocks
        'w_f_cat':   0.1 * jax.random.normal(ks[10], (D, D), jnp.float32),
        'w_f_txt':   0.1 * jax.random.normal(ks[11], (D, D), jnp.float32),
        'w_f_id':    0.1 * jax.random.normal(ks[12], (D, D), jnp.float32),
        'b_f':       0.01 * jax.random.normal(ks[13], (1, D), jnp.float32),
    }

    color = jax.random.randint(ks[17], (B, L, C), 0, NC, dtype=jnp.int32)
    batch = {
        'in_item_id':  jax.random.randint(ks[14], (B, L), 1, NI, dtype=jnp.int32),
        'in_brand':    jax.random.randint(ks[15], (B, L), 0, NB, dtype=jnp.int32),
        'in_material': jax.random.randint(ks[16], (B, L), 0, NM, dtype=jnp.int32),
        'in_author':   jax.random.randint(ks[18], (B, L), 0, NA, dtype=jnp.int32),
        'in_color':    color,
        'in_color_num': (color != 0).sum(axis=-1).astype(jnp.int32),
        'in_price':    jax.random.uniform(ks[19], (B, L), jnp.float32, 0.0, 5.0),
    }

    out = encode(batch, params)
    out = jax.block_until_ready(out)

    ref = reference(batch, params)
    assert out.shape == (B, L, D)
    # bf16 fused-table operands + approx reciprocal -> slightly looser tolerance
    # than a pure-f32 path (output magnitudes are ~1e-2..1e-1 here).
    assert jnp.allclose(out, ref, atol=5e-3, rtol=5e-2), "mismatch vs JAX reference"

    print("KERNEL_OK")
</pallas_src>

<mosaic_0001>
module attributes {stable_mosaic.version = 11 : i64} {
  func.func @_encoder_kernel(%arg0: i32, %arg1: memref<8x9xi32, #tpu.memory_space<vmem>>, %arg2: memref<8x1xf32, #tpu.memory_space<vmem>>, %arg3: memref<256x32xbf16, #tpu.memory_space<vmem>>, %arg4: memref<3x32xf32, #tpu.memory_space<vmem>>, %arg5: memref<8x32xf32, #tpu.memory_space<vmem>>) attributes {dimension_semantics = [#tpu.dimension_semantics<parallel>], iteration_bounds = array<i64: 2>, scalar_prefetch = 0 : i64, scratch_operands = 0 : i64, tpu.core_type = #tpu.core_type<tc>, window_params = [{transform_indices = @transform_0, window_bounds = array<i64: 8, 9>}, {transform_indices = @transform_1, window_bounds = array<i64: 8, 1>}, {pipeline_mode = #tpu.pipeline_mode<synchronous>, transform_indices = @transform_2, window_bounds = array<i64: 256, 32>}, {pipeline_mode = #tpu.pipeline_mode<synchronous>, transform_indices = @transform_3, window_bounds = array<i64: 3, 32>}, {transform_indices = @transform_4, window_bounds = array<i64: 8, 32>}]} {
    %c0 = arith.constant 0 : index
    %c0_0 = arith.constant 0 : index
    %0 = vector.load %arg1[%c0, %c0_0] : memref<8x9xi32, #tpu.memory_space<vmem>>, vector<8x9xi32>
    %1 = vector.extract_strided_slice %0 {offsets = [0, 0], sizes = [8, 1], strides = [1, 1]} : vector<8x9xi32> to vector<8x1xi32>
    %2 = vector.extract_strided_slice %0 {offsets = [0, 1], sizes = [8, 1], strides = [1, 1]} : vector<8x9xi32> to vector<8x1xi32>
    %c32_i32 = arith.constant 32 : i32
    %3 = vector.broadcast %c32_i32 : i32 to vector<8x1xi32>
    %4 = arith.addi %2, %3 : vector<8x1xi32>
    %5 = vector.extract_strided_slice %0 {offsets = [0, 2], sizes = [8, 1], strides = [1, 1]} : vector<8x9xi32> to vector<8x1xi32>
    %c64_i32 = arith.constant 64 : i32
    %6 = vector.broadcast %c64_i32 : i32 to vector<8x1xi32>
    %7 = arith.addi %5, %6 : vector<8x1xi32>
    %8 = vector.extract_strided_slice %0 {offsets = [0, 3], sizes = [8, 1], strides = [1, 1]} : vector<8x9xi32> to vector<8x1xi32>
    %c112_i32 = arith.constant 112 : i32
    %9 = vector.broadcast %c112_i32 : i32 to vector<8x1xi32>
    %10 = arith.addi %8, %9 : vector<8x1xi32>
    %11 = vector.extract_strided_slice %0 {offsets = [0, 4], sizes = [8, 1], strides = [1, 1]} : vector<8x9xi32> to vector<8x1xi32>
    %12 = arith.sitofp %11 : vector<8x1xi32> to vector<8x1xf32>
    %c0_1 = arith.constant 0 : index
    %c0_2 = arith.constant 0 : index
    %13 = vector.load %arg2[%c0_1, %c0_2] : memref<8x1xf32, #tpu.memory_space<vmem>>, vector<8x1xf32>
    %cst = arith.constant 1.000000e+00 : f32
    %14 = vector.broadcast %cst : f32 to vector<8x1xf32>
    %15 = arith.maximumf %12, %14 : vector<8x1xf32>
    %16 = tpu.reciprocal %15 {approx = true} : vector<8x1xf32> -> vector<8x1xf32>
    %17 = arith.truncf %16 : vector<8x1xf32> to vector<8x1xbf16>
    %cst_3 = arith.constant 0.000000e+00 : f32
    %18 = vector.broadcast %cst_3 : f32 to vector<8x32xf32>
    %19 = tpu.iota {dimensions = array<i32: 1>} : vector<8x256xi32>
    %c0_i32 = arith.constant 0 : i32
    %20 = vector.broadcast %c0_i32 : i32 to vector<8x256xi32>
    %21 = arith.addi %19, %20 : vector<8x256xi32>
    %22 = vector.broadcast %1 : vector<8x1xi32> to vector<8x256xi32>
    %23 = arith.cmpi eq, %21, %22 : vector<8x256xi32>
    %24 = arith.extui %23 : vector<8x256xi1> to vector<8x256xi32>
    %25 = arith.sitofp %24 : vector<8x256xi32> to vector<8x256xf32>
    %26 = arith.truncf %25 : vector<8x256xf32> to vector<8x256xbf16>
    %27 = vector.broadcast %4 : vector<8x1xi32> to vector<8x256xi32>
    %28 = arith.cmpi eq, %21, %27 : vector<8x256xi32>
    %29 = arith.extui %28 : vector<8x256xi1> to vector<8x256xi32>
    %30 = arith.sitofp %29 : vector<8x256xi32> to vector<8x256xf32>
    %31 = arith.truncf %30 : vector<8x256xf32> to vector<8x256xbf16>
    %32 = vector.broadcast %7 : vector<8x1xi32> to vector<8x256xi32>
    %33 = arith.cmpi eq, %21, %32 : vector<8x256xi32>
    %34 = arith.extui %33 : vector<8x256xi1> to vector<8x256xi32>
    %35 = arith.sitofp %34 : vector<8x256xi32> to vector<8x256xf32>
    %36 = arith.truncf %35 : vector<8x256xf32> to vector<8x256xbf16>
    %37 = vector.broadcast %10 : vector<8x1xi32> to vector<8x256xi32>
    %38 = arith.cmpi eq, %21, %37 : vector<8x256xi32>
    %39 = arith.extui %38 : vector<8x256xi1> to vector<8x256xi32>
    %40 = arith.sitofp %39 : vector<8x256xi32> to vector<8x256xf32>
    %41 = arith.truncf %40 : vector<8x256xf32> to vector<8x256xbf16>
    %42 = vector.extract_strided_slice %0 {offsets = [0, 5], sizes = [8, 1], strides = [1, 1]} : vector<8x9xi32> to vector<8x1xi32>
    %c96_i32 = arith.constant 96 : i32
    %43 = vector.broadcast %c96_i32 : i32 to vector<8x1xi32>
    %44 = arith.addi %42, %43 : vector<8x1xi32>
    %45 = vector.broadcast %44 : vector<8x1xi32> to vector<8x256xi32>
    %46 = arith.cmpi eq, %21, %45 : vector<8x256xi32>
    %47 = arith.extui %46 : vector<8x256xi1> to vector<8x256xi32>
    %48 = arith.sitofp %47 : vector<8x256xi32> to vector<8x256xf32>
    %49 = arith.truncf %48 : vector<8x256xf32> to vector<8x256xbf16>
    %50 = vector.extract_strided_slice %0 {offsets = [0, 6], sizes = [8, 1], strides = [1, 1]} : vector<8x9xi32> to vector<8x1xi32>
    %c96_i32_4 = arith.constant 96 : i32
    %51 = vector.broadcast %c96_i32_4 : i32 to vector<8x1xi32>
    %52 = arith.addi %50, %51 : vector<8x1xi32>
    %53 = vector.broadcast %52 : vector<8x1xi32> to vector<8x256xi32>
    %54 = arith.cmpi eq, %21, %53 : vector<8x256xi32>
    %55 = arith.extui %54 : vector<8x256xi1> to vector<8x256xi32>
    %56 = arith.sitofp %55 : vector<8x256xi32> to vector<8x256xf32>
    %57 = arith.truncf %56 : vector<8x256xf32> to vector<8x256xbf16>
    %58 = arith.addf %49, %57 : vector<8x256xbf16>
    %59 = vector.extract_strided_slice %0 {offsets = [0, 7], sizes = [8, 1], strides = [1, 1]} : vector<8x9xi32> to vector<8x1xi32>
    %c96_i32_5 = arith.constant 96 : i32
    %60 = vector.broadcast %c96_i32_5 : i32 to vector<8x1xi32>
    %61 = arith.addi %59, %60 : vector<8x1xi32>
    %62 = vector.broadcast %61 : vector<8x1xi32> to vector<8x256xi32>
    %63 = arith.cmpi eq, %21, %62 : vector<8x256xi32>
    %64 = arith.extui %63 : vector<8x256xi1> to vector<8x256xi32>
    %65 = arith.sitofp %64 : vector<8x256xi32> to vector<8x256xf32>
    %66 = arith.truncf %65 : vector<8x256xf32> to vector<8x256xbf16>
    %67 = arith.addf %58, %66 : vector<8x256xbf16>
    %68 = vector.extract_strided_slice %0 {offsets = [0, 8], sizes = [8, 1], strides = [1, 1]} : vector<8x9xi32> to vector<8x1xi32>
    %c96_i32_6 = arith.constant 96 : i32
    %69 = vector.broadcast %c96_i32_6 : i32 to vector<8x1xi32>
    %70 = arith.addi %68, %69 : vector<8x1xi32>
    %71 = vector.broadcast %70 : vector<8x1xi32> to vector<8x256xi32>
    %72 = arith.cmpi eq, %21, %71 : vector<8x256xi32>
    %73 = arith.extui %72 : vector<8x256xi1> to vector<8x256xi32>
    %74 = arith.sitofp %73 : vector<8x256xi32> to vector<8x256xf32>
    %75 = arith.truncf %74 : vector<8x256xf32> to vector<8x256xbf16>
    %76 = arith.addf %67, %75 : vector<8x256xbf16>
    %77 = vector.broadcast %17 : vector<8x1xbf16> to vector<8x256xbf16>
    %78 = arith.mulf %76, %77 : vector<8x256xbf16>
    %79 = arith.addf %26, %31 : vector<8x256xbf16>
    %80 = arith.addf %79, %36 : vector<8x256xbf16>
    %81 = arith.addf %80, %41 : vector<8x256xbf16>
    %82 = arith.addf %81, %78 : vector<8x256xbf16>
    %c0_7 = arith.constant 0 : index
    %c0_8 = arith.constant 0 : index
    %83 = vector.load %arg3[%c0_7, %c0_8] : memref<256x32xbf16, #tpu.memory_space<vmem>>, vector<256x32xbf16>
    %cst_9 = arith.constant dense<0.000000e+00> : vector<8x32xf32>
    %84 = tpu.matmul %82, %83, %cst_9 {dimension_numbers = #tpu.dot_dimension_numbers<[1], [0], [0], [1], [0, 0, 1, 1], [], []>} : vector<8x256xbf16>, vector<256x32xbf16>, vector<8x32xf32> -> vector<8x32xf32>
    %85 = arith.addf %18, %84 : vector<8x32xf32>
    %c0_10 = arith.constant 0 : index
    %c0_11 = arith.constant 0 : index
    %86 = vector.load %arg4[%c0_10, %c0_11] : memref<3x32xf32, #tpu.memory_space<vmem>>, vector<3x32xf32>
    %cst_12 = arith.constant 0.000000e+00 : f32
    %87 = vector.broadcast %cst_12 : f32 to vector<8x1xf32>
    %88 = arith.maximumf %13, %87 : vector<8x1xf32>
    %89 = vector.extract_strided_slice %86 {offsets = [0, 0], sizes = [1, 32], strides = [1, 1]} : vector<3x32xf32> to vector<1x32xf32>
    %90 = vector.broadcast %88 : vector<8x1xf32> to vector<8x32xf32>
    %91 = vector.broadcast %89 : vector<1x32xf32> to vector<8x32xf32>
    %92 = arith.mulf %90, %91 : vector<8x32xf32>
    %93 = arith.addf %85, %92 : vector<8x32xf32>
    %cst_13 = arith.constant 0.000000e+00 : f32
    %94 = vector.broadcast %cst_13 : f32 to vector<8x1xf32>
    %95 = arith.subf %94, %13 : vector<8x1xf32>
    %cst_14 = arith.constant 0.000000e+00 : f32
    %96 = vector.broadcast %cst_14 : f32 to vector<8x1xf32>
    %97 = arith.maximumf %95, %96 : vector<8x1xf32>
    %98 = vector.extract_strided_slice %86 {offsets = [1, 0], sizes = [1, 32], strides = [1, 1]} : vector<3x32xf32> to vector<1x32xf32>
    %99 = vector.broadcast %97 : vector<8x1xf32> to vector<8x32xf32>
    %100 = vector.broadcast %98 : vector<1x32xf32> to vector<8x32xf32>
    %101 = arith.mulf %99, %100 : vector<8x32xf32>
    %102 = arith.addf %93, %101 : vector<8x32xf32>
    %103 = vector.extract_strided_slice %86 {offsets = [2, 0], sizes = [1, 32], strides = [1, 1]} : vector<3x32xf32> to vector<1x32xf32>
    %104 = vector.broadcast %103 : vector<1x32xf32> to vector<8x32xf32>
    %105 = arith.addf %102, %104 : vector<8x32xf32>
    %c0_15 = arith.constant 0 : index
    %c0_16 = arith.constant 0 : index
    %106 = vector.load %arg5[%c0_15, %c0_16] : memref<8x32xf32, #tpu.memory_space<vmem>>, vector<8x32xf32>
    tpu.vector_store %arg5[%c0_15, %c0_16], %105 {strides = array<i32>} : memref<8x32xf32, #tpu.memory_space<vmem>>, vector<8x32xf32>,
    return
  }
  func.func @transform_0(%arg0: i32) -> (i32, i32) {
    %c0_i32 = arith.constant 0 : i32
    %c0_i32_0 = arith.constant 0 : i32
    return %arg0, %c0_i32 : i32, i32
  }
  func.func @transform_1(%arg0: i32) -> (i32, i32) {
    %c0_i32 = arith.constant 0 : i32
    %c0_i32_0 = arith.constant 0 : i32
    return %arg0, %c0_i32 : i32, i32
  }
  func.func @transform_2(%arg0: i32) -> (i32, i32) {
    %c0_i32 = arith.constant 0 : i32
    %c0_i32_0 = arith.constant 0 : i32
    %c0_i32_1 = arith.constant 0 : i32
    return %c0_i32, %c0_i32_0 : i32, i32
  }
  func.func @transform_3(%arg0: i32) -> (i32, i32) {
    %c0_i32 = arith.constant 0 : i32
    %c0_i32_0 = arith.constant 0 : i32
    %c0_i32_1 = arith.constant 0 : i32
    return %c0_i32, %c0_i32_0 : i32, i32
  }
  func.func @transform_4(%arg0: i32) -> (i32, i32) {
    %c0_i32 = arith.constant 0 : i32
    %c0_i32_0 = arith.constant 0 : i32
    return %arg0, %c0_i32 : i32, i32
  }
}

</mosaic_0001>

<bundles_post_ra>
// kernel: tpu_custom_call.1
= control target key start
LH: loop header
LB: loop body
LE: loop exit
PB: predicated region body
PF: predicated region fallthrough
CT: control target
= control target key end

     0   :  { %9 = vsyncpa [#allocation3], 0  ;;  %s1037_s0 = inlined_call_operand.vmem [shape: s32[16,9], index: 0, kind: input, shape index: {}]   ;;  %s1038_s1 = inlined_call_operand.vmem [shape: f32[16,1], index: 1, kind: input, shape index: {}]   ;;  %s1039_s2 = inlined_call_operand.vmem [shape: bf16[256,32], index: 2, kind: input, shape index: {}]   ;;  %s1040_s3 = inlined_call_operand.vmem [shape: f32[3,32], index: 3, kind: input, shape index: {}]   ;;  %s1041_s4 = inlined_call_operand.hbm [shape: f32[16,32], index: 4, kind: output, shape index: {}]  }
   0x1   :  { %11 = vsyncpa [#allocation3 + $0x1], 0  ;;  %s859_s15 = smov 0   ;;  %s861_s16 = smov 0  }
   0x2   :  { %s863_s17 = smov 0   ;;  %s865_s18 = smov 0  }
   0x3 LB: > { %s880_s19 = sadd.s32 4294967295, %s821_s18   ;;  %s618_s20 = sadd.s32 4294967294, %s821_s18   ;;  %s821_s18 = sphi %s865_s18, %s1047_s18   ;;  %s817_s17 = sphi %s863_s17, %s1046_s17   ;;  %s813_s16 = sphi %s861_s16, %s1045_s16   ;;  %s809_s15 = sphi %s859_s15, %s1044_s15  }
   0x4   : > { %s884_s21 = sadd.s32 1, %s821_s18   ;;  %s118_s22 = sadd.s32 1, %s817_s17 }
   0x5   : > { %s115_s23 = ssub.s32 %s821_s18, %s884_s21  ;;  %p128_p0 = scmp.ne.s32.totalorder %s817_s17, %s813_s16 }
   0x6   : > { %p116_p1 = scmp.eq.s32.totalorder %s115_s23, 0  ;;  %p129_p2 = scmp.eq.s32.totalorder %s880_s19, 1 }
   0x7   : > { %p134_p3 = scmp.ne.s32.totalorder %s813_s16, %s809_s15  ;;  %p135_p4 = scmp.eq.s32.totalorder %s618_s20, 1 }
   0x8   : > { %s895_s24 = scalar_select %p116_p1, %s817_s17, %s118_s22  }
   0x9   : > { %p897_p5 = por %p129_p2, %p128_p0  ;;  %p901_p6 = por %p135_p4, %p134_p3 }
   0xa   : > { %p621_p7 = scmp.ge.s32.totalorder %s821_s18, 1  ;;  %p173_p8 = scmp.lt.s32.totalorder %s821_s18, 3 }
   0xc   : > { %p174_p9 = pnand %p621_p7, %p173_p8 }
   0xd   : > { %p202_p10 = scmp.lt.s32.totalorder (!%p174_p9), %s880_s19, 1  ;;  %s199_s11 = sand.u32 (!%p174_p9), 1, %s813_s16  }
   0xe   : > { %177 = sbr.rel (%p174_p9) target bundleno = 393 (0x189), region = 36  ;;  %s622_s12 = sshll.u32 (!%p174_p9), %s199_s11, 3 }
   0xf   : > { %s201_s14 = scalar_lea.vmem (!%p174_p9), [#allocation2], %s622_s12  ;;  %s534_s28 = scalar_lea.sflag (!%p174_p9), [#allocation3], %s199_s11 }
  0x10   : > { %s547_s20 = sshll.u32 (!%p174_p9), %s201_s14, 4  ;;  %s833_s5 = smov (!%p174_p9), [#allocation2]   ;;  %s548_s20 = int_to_ptr.vmem [resolvable:$true] %s547_s20 }
  0x11   : > { %s761_s30 = scalar_lea.vmem (!%p174_p9), %s548_s20, 128  ;;  %s765_s7 = sshll.u32 (!%p174_p9), %s833_s5, 4  ;;  %s766_s7 = int_to_ptr.vmem [resolvable:$false] %s765_s7 }
  0x12   : > { %p762_p11 = scmp.ne.s32.totalorder (!%p174_p9), %s548_s20, %s761_s30  ;;  %p768_p0 = scmp.lt.s32.totalorder (!%p174_p9), %s548_s20, %s766_s7 }
  0x13   : > { %v743_v0 = vld [vmem:[%s1039_s2 + $0x78] sm:$0xff]   ;;  %v823_v1 = vmov 0   ;;  %v824_v2 = vmov 5   ;;  %s913_s29 = scalar_select %p202_p10, %s880_s19, 1  ;;  %v745_v4 = vld [vmem:[%s1039_s2 + $0x70] sm:$0xff]   ;;  %v747_v7 = vld [vmem:[%s1039_s2 + $0x68] sm:$0xff]   ;;  %v220_v38 = vlaneseq }
  0x14   : > { %732 = vset.pattern.permute.xlu1 %v823_v1  ;;  %733 = vset.pattern.permute.xlu0 %v824_v2  ;;  %v744_v3 = vld [vmem:[%s1039_s2 + $0x38] sm:$0xff]   ;;  %v746_v5 = vld [vmem:[%s1039_s2 + $0x30] sm:$0xff]   ;;  %v748_v11 = vld [vmem:[%s1039_s2 + $0x28] sm:$0xff]   ;;  %v825_v14 = vmov 1   ;;  %v826_v16 = vmov 6   ;;  %v827_v19 = vmov 7   ;;  %p763_p12 = pnand %p762_p11, %p897_p5 }
  0x15   : > { %661 = vmatprep.subr.bf16.mxu0 %v743_v0  ;;  %s623_s6 = sshll.u32 %s913_s29, 3  ;;  %v749_v13 = vld [vmem:[%s1039_s2 + $0x60] sm:$0xff]   ;;  %v751_v17 = vld [vmem:[%s1039_s2 + $0x58] sm:$0xff]   ;;  %v828_v21 = vmov 2   ;;  %v753_v22 = vld [vmem:[%s1039_s2 + $0x50] sm:$0xff]   ;;  %v829_v23 = vmov 8  }
  0x16   : > { %s205_s13 = scalar_lea.vmem %s1037_s0, %s623_s6  ;;  %662 = vmatpush3.bf16.msra.mxu0 %v744_v3  ;;  %v750_v15 = vld [vmem:[%s1039_s2 + $0x20] sm:$0xff]   ;;  %v752_v20 = vld [vmem:[%s1039_s2 + $0x18] sm:$0xff]   ;;  %v754_v24 = vld [vmem:[%s1039_s2 + $0x10] sm:$0xff]   ;;  %v830_v26 = vmov 4   ;;  %v831_v30 = vmov 3   ;;  %s209_s10 = scalar_lea.vmem %s1038_s1, %s623_s6  ;;  %v974_v39 = vand.u32 127, %v220_v38 }
  0x17   : > { %v211_v6 = vld [vmem:[%s205_s13] sm:$0xff]  ;;  %663 = vmatprep.subr.bf16.mxu0 %v745_v4  ;;  %v755_v25 = vld [vmem:[%s1039_s2 + $0x48] sm:$0xff]   ;;  %v832_v44 = vmov 0.0   ;;  %s658_s13 = sshll.u32 %s880_s19, 7  ;;  %p764_p13 = pneg %p763_p12 }
  0x18   : > { %224 = vperm.xlu1 %732, %v211_v6   ;;  %v267_v8 = vadd.s32 96, %v211_v6  ;;  %v212_v9 = vadd.s32 32, %v211_v6  ;;  %v215_v10 = vcvt.s32.f32 %v211_v6  ;;  %v213_v18 = vadd.s32 64, %v211_v6  ;;  %v756_v29 = vld [vmem:[%s1039_s2 + $0x8] sm:$0xff]   ;;  %v757_v32 = vld [vmem:[%s1039_s2 + $0x40] sm:$0xff]   ;;  %s545_s27 = scalar_lea.hbm %s1041_s4, %s658_s13  ;;  %s767_s19 = scalar_lea.vmem %s766_s7, 256 }
  0x19   : > { %v214_v27 = vadd.s32 112, %v211_v6  ;;  %v758_v33 = vld [vmem:[%s1039_s2] sm:$0xff]   ;;  %v977_v41 = vadd.s32 128, %v974_v39  ;;  %p769_p1 = scmp.lt.s32.totalorder %s767_s19, %s761_s30 }
  0x1a   : > { %269 = vperm.xlu0 %733, %v267_v8   ;;  %664 = vmatpush3.bf16.msra.mxu0 %v746_v5  ;;  %v217_v12 = vmax.f32 %v215_v10, 1.0  ;;  %v216_v34 = vld [vmem:[%s209_s10] sm:$0xff] }
  0x1b   : > { %665 = vmatprep.subr.bf16.mxu0 %v747_v7  ;;  %v366_v35 = vmax.f32 %v216_v34, 0.0  ;;  %v513_v36 = vsub.f32 0.0, %v216_v34  ;;  %p770_p2 = por %p769_p1, %p768_p0 }
  0x1c   : > { %735 = vset.pattern.permute.xlu1 %v825_v14  ;;  %759 = vrcp.f32 %v217_v12 }
  0x1d   : > { %235 = vperm.xlu1 %735, %v212_v9   ;;  %v514_v37 = vmax.f32 %v513_v36, 0.0  ;;  %p771_p3 = pnand %p770_p2, %p764_p13 }
  0x1e   : > { %734 = vset.pattern.permute.xlu0 %v826_v16  ;;  %666 = vmatpush3.bf16.msra.mxu0 %v748_v11 }
  0x1f   : > { %280 = vperm.xlu0 %734, %v267_v8   ;;  %667 = vmatprep.subr.bf16.mxu0 %v749_v13 }
  0x21   : > { %736 = vset.pattern.permute.xlu1 %v827_v19 }
  0x22   : > { %293 = vperm.xlu1 %736, %v267_v8   ;;  %668 = vmatpush3.bf16.msra.mxu0 %v750_v15 }
  0x23   : > { %737 = vset.pattern.permute.xlu0 %v828_v21  ;;  %669 = vmatprep.subr.bf16.mxu0 %v751_v17 }
  0x24   : > { %246 = vperm.xlu0 %737, %v213_v18  }
  0x26   : > { %738 = vset.pattern.permute.xlu1 %v829_v23  ;;  %670 = vmatpush3.bf16.msra.mxu0 %v752_v20 }
  0x27   : > { %306 = vperm.xlu1 %738, %v267_v8   ;;  %671 = vmatprep.subr.bf16.mxu0 %v753_v22 }
  0x28   : > { %740 = vset.pattern.permute.xlu0 %v830_v26 }
  0x29   : > { %v760_v28 = vpop.eup %759 }
  0x2a   : > { %672 = vmatpush3.bf16.msra.mxu0 %v754_v24  ;;  %v219_v31 = vpack.c.bf16 %v760_v28, %v760_v28 }
  0x2b   : > { %739 = vset.pattern.permute.xlu1 %v831_v30  ;;  %673 = vmatprep.subr.bf16.mxu0 %v755_v25 }
  0x2c   : > { %257 = vperm.xlu1 %739, %v214_v27   ;;  %320 = vperm.xlu0 %740, %v219_v31  }
  0x2e   : > { %674 = vmatpush3.bf16.msra.mxu0 %v756_v29 }
  0x2f   : > { %675 = vmatprep.subr.bf16.mxu0 %v757_v32 }
  0x30   : > { %741 = vset.pattern.permute.xlu1 %v823_v1  ;;  %742 = vset.pattern.permute.xlu0 %v823_v1 }
  0x31   : > { %369 = vperm.xlu1 %741, %v366_v35   ;;  %v373_v35 = vshrl.u32 %v220_v38, 7 }
  0x32   : > { %676 = vmatpush3.bf16.msra.mxu0 %v758_v33 }
  0x33   : > { %v374_v36 = vsub.s32 0, %v373_v35 }
  0x35   : > { %517 = vperm.xlu1 %741, %v514_v37   ;;  %v365_v37 = vld [vmem:[%s1040_s3] sm:$0x7] }
  0x93   : > { %v225_v40 = vpop.permute.xlu1 %224 }
  0x94   : > { %vm226_vm6 = vcmp.eq.s32.totalorder %v974_v39, %v225_v40  ;;  %vm227_vm7 = vcmp.eq.s32.totalorder %v977_v41, %v225_v40  ;;  %v522_v40 = vsub.s32 1, %v373_v35 }
  0x95   : > { %v270_v42 = vpop.permute.xlu0 %269  ;;  %v625_v60 = vsel %vm226_vm6, 1.0, %v832_v44  ;;  %v626_v61 = vsel %vm227_vm7, 1.0, %v832_v44 }
  0x96   : > { %vm271_vm0 = vcmp.eq.s32.totalorder %v974_v39, %v270_v42  ;;  %vm272_vm1 = vcmp.eq.s32.totalorder %v977_v41, %v270_v42  ;;  %v232_v9 = vpack.c.bf16 %v625_v60, %v625_v60  ;;  %v233_v10 = vpack.c.bf16 %v626_v61, %v626_v61 }
  0x97   : > { %v633_v45 = vsel %vm271_vm0, 1.0, %v832_v44  ;;  %v634_v46 = vsel %vm272_vm1, 1.0, %v832_v44  ;;  %vm531_vm0 = vcmask 261120  }
  0x98   : > { %v236_v43 = vpop.permute.xlu1 %235  ;;  %v277_v50 = vpack.c.bf16 %v633_v45, %v633_v45  ;;  %v278_v51 = vpack.c.bf16 %v634_v46, %v634_v46 }
  0x99   : > { %vm237_vm2 = vcmp.eq.s32.totalorder %v974_v39, %v236_v43  ;;  %vm238_vm3 = vcmp.eq.s32.totalorder %v977_v41, %v236_v43  ;;  %v528_v43 = vsub.s32 2, %v373_v35 }
  0x9a   : > { %v281_v47 = vpop.permute.xlu0 %280  ;;  %v627_v52 = vsel %vm237_vm2, 1.0, %v832_v44  ;;  %v628_v53 = vsel %vm238_vm3, 1.0, %v832_v44 }
  0x9b   : > { %vm282_vm4 = vcmp.eq.s32.totalorder %v974_v39, %v281_v47  ;;  %vm283_vm5 = vcmp.eq.s32.totalorder %v977_v41, %v281_v47  ;;  %v243_v62 = vpack.c.bf16 %v627_v52, %v627_v52  ;;  %v244_v63 = vpack.c.bf16 %v628_v53, %v628_v53 }
  0x9c   : > { %v635_v48 = vsel %vm282_vm4, 1.0, %v832_v44  ;;  %v636_v49 = vsel %vm283_vm5, 1.0, %v832_v44  ;;  %v529_v38 = vrot.slane %v365_v37, %v528_v43 }
  0x9d   : > { %v294_v54 = vpop.permute.xlu1 %293  ;;  %v288_v55 = vpack.c.bf16 %v635_v48, %v635_v48  ;;  %v289_v56 = vpack.c.bf16 %v636_v49, %v636_v49  ;;  %v325_v17 = vadd.bf16 %v243_v62, %v232_v9  ;;  %v326_v18 = vadd.bf16 %v244_v63, %v233_v10 }
  0x9e   : > { %vm295_vm8 = vcmp.eq.s32.totalorder %v974_v39, %v294_v54  ;;  %vm296_vm9 = vcmp.eq.s32.totalorder %v977_v41, %v294_v54 }
  0x9f   : > { %v637_v57 = vsel %vm295_vm8, 1.0, %v832_v44  ;;  %v638_v58 = vsel %vm296_vm9, 1.0, %v832_v44  ;;  %v247_v59 = vpop.permute.xlu0 %246  ;;  %v290_v0 = vadd.bf16 %v288_v55, %v277_v50  ;;  %v291_v1 = vadd.bf16 %v289_v56, %v278_v51 }
  0xa0   : > { %vm248_vm10 = vcmp.eq.s32.totalorder %v974_v39, %v247_v59  ;;  %vm249_vm11 = vcmp.eq.s32.totalorder %v977_v41, %v247_v59  ;;  %v301_v2 = vpack.c.bf16 %v637_v57, %v637_v57  ;;  %v302_v3 = vpack.c.bf16 %v638_v58, %v638_v58 }
  0xa1   : > { %v629_v5 = vsel %vm248_vm10, 1.0, %v832_v44  ;;  %v630_v6 = vsel %vm249_vm11, 1.0, %v832_v44 }
  0xa2   : > { %v307_v4 = vpop.permute.xlu1 %306  ;;  %v254_v13 = vpack.c.bf16 %v629_v5, %v629_v5  ;;  %v255_v14 = vpack.c.bf16 %v630_v6, %v630_v6  ;;  %v303_v15 = vadd.bf16 %v301_v2, %v290_v0  ;;  %v304_v16 = vadd.bf16 %v302_v3, %v291_v1 }
  0xa3   : > { %vm308_vm12 = vcmp.eq.s32.totalorder %v974_v39, %v307_v4  ;;  %vm309_vm13 = vcmp.eq.s32.totalorder %v977_v41, %v307_v4 }
  0xa4   : > { %v639_v7 = vsel %vm308_vm12, 1.0, %v832_v44  ;;  %v640_v8 = vsel %vm309_vm13, 1.0, %v832_v44  ;;  %v327_v25 = vadd.bf16 %v325_v17, %v254_v13  ;;  %v328_v28 = vadd.bf16 %v326_v18, %v255_v14 }
  0xa5   : > { %v314_v11 = vpack.c.bf16 %v639_v7, %v639_v7  ;;  %v315_v12 = vpack.c.bf16 %v640_v8, %v640_v8 }
  0xa7   : > { %v258_v19 = vpop.permute.xlu1 %257  ;;  %v316_v20 = vadd.bf16 %v314_v11, %v303_v15  ;;  %v317_v21 = vadd.bf16 %v315_v12, %v304_v16  ;;  %v321_v24 = vpop.permute.xlu0 %320 }
  0xa8   : > { %vm259_vm14 = vcmp.eq.s32.totalorder %v974_v39, %v258_v19  ;;  %vm260_vm15 = vcmp.eq.s32.totalorder %v977_v41, %v258_v19  ;;  %v375_v41 = vrot.slane %v365_v37, %v374_v36 }
  0xa9   : > { %v631_v22 = vsel %vm259_vm14, 1.0, %v832_v44  ;;  %v632_v23 = vsel %vm260_vm15, 1.0, %v832_v44  ;;  %v323_v29 = vmul.bf16 %v321_v24, %v316_v20  ;;  %v324_v30 = vmul.bf16 %v321_v24, %v317_v21 }
  0xaa   : > { %v265_v26 = vpack.c.bf16 %v631_v22, %v631_v22  ;;  %v266_v27 = vpack.c.bf16 %v632_v23, %v632_v23  ;;  %v523_v44 = vrot.slane %v365_v37, %v522_v40 }
  0xac   : > { %v329_v31 = vadd.bf16 %v327_v25, %v265_v26  ;;  %v330_v32 = vadd.bf16 %v328_v28, %v266_v27  ;;  %v370_v39 = vpop.permute.xlu1 %369 }
  0xad   : > { %v376_v47 = vmul.f32 %v375_v41, %v370_v39 }
  0xae   : > { %v331_v33 = vadd.bf16 %v329_v31, %v323_v29  ;;  %v332_v34 = vadd.bf16 %v330_v32, %v324_v30 }
  0xb0   : > { %505 = vmatprep.mubr.bf16.mxu0 %v332_v34  ;;  %v518_v45 = vpop.permute.xlu1 %517 }
  0xb1   : > { %506 = vmatmul.mubr.bf16.vlgmr.msra.gmra.mxu0 %v331_v33  ;;  %v524_v50 = vmul.f32 %v523_v44, %v518_v45 }
 0x171   : > { %v677_v42 = vpop.f32.mrf.mxu0 }
 0x173   : > { %v678_v46 = vpop.f32.mrf.mxu0 }
 0x174   : > { %v679_v48 = vadd.f32 %v678_v46, %v677_v42 }
 0x175   : > { %v680_v49 = vpop.f32.mrf.mxu0 }
 0x176   : > { %v508_v51 = vadd.f32 %v679_v48, %v376_v47 }
 0x177   : > { %v681_v52 = vpop.f32.mrf.mxu0 }
 0x178   : > { %v525_v53 = vadd.f32 %v524_v50, %v508_v51 }
 0x17a   : > { %v530_v54 = vadd.f32 %v529_v38, %v525_v53 }
 0x17c   : > { %532 = vst.msk [vmem:[%s201_s14] sm:$0xff] %vm531_vm0, %v530_v54 }
 0x17d   : > { %774 = shalt.err (!%p771_p3)
}
 0x17e   : > { %s775_s8 = scalar_lea.hbm %s545_s27, 128  ;;  %s779_s29 = scalar_lea.hbm %s1041_s4, 256 }
 0x17f   : > { %p776_p4 = scmp.ne.s32.totalorder %s545_s27, %s775_s8  ;;  %p780_p9 = scmp.lt.s32.totalorder %s545_s27, %s1041_s4 }
 0x180   : > { %p781_p10 = scmp.lt.s32.totalorder %s779_s29, %s775_s8 }
 0x181   : > { %p777_p7 = pnand %p776_p4, %p897_p5 }
 0x182   : > { %p782_p11 = por %p781_p10, %p780_p9 }
 0x183   : > { %p778_p8 = pneg %p777_p7 }
 0x185   : > { %p783_p12 = pnand %p782_p11, %p778_p8 }
 0x187   : > { %786 = shalt.err (!%p783_p12)
}
 0x188   : > { %683 = dma.vmem_to_hbm [thread:$0]  (%p897_p5), %s548_s20, 128, %s545_s27, %s534_s28  }
 0x189 PF: > { %p689_p13 = scmp.ge.s32.totalorder %s821_s18, 2  ;;  %s559_s12 = sand.u32 1, %s809_s15  }
 0x18a   : > { %s560_s13 = scalar_lea.sflag [#allocation3], %s559_s12 }
 0x18b   : > { %p686_p0 = pnand %p689_p13, %p901_p6 }
 0x18d   : > { %p687_p1 = pneg %p686_p0 }
 0x18f   : > { %804 = dma.done.wait (%p687_p1), %s560_s13, 128  }
 0x190   : > { %806 = vsyncadd (%p687_p1), %s560_s13, 4294967168  ;;  %p14_p2 = scmp.ge.s32.totalorder %s884_s21, 4   ;;  %s1044_s15 = smov %s813_s16 }
 0x191   : > { %s1045_s16 = smov %s817_s17  ;;  %s1046_s17 = smov %s895_s24 }
 0x192   : > { %s1047_s18 = smov %s884_s21  ;;  %16 = sbr.rel (!%p14_p2) target bundleno = 3 (0x3), region = 74 }
 0x197   :  { %565 = vsyncpa [#allocation3], 1 }
 0x198   :  { %567 = vsyncpa [#allocation3 + $0x1], 1 }

</bundles_post_ra>
